<compile_context>
chip_gen: v6e
topology: v6e:2x2x1
jax: 0.10.0
libtpu: 0.0.40
codegen_flags: <defaults>
</compile_context>

<pallas_src>
import functools

import jax
import jax.numpy as jnp
from jax.experimental import pallas as pl
from jax.experimental.pallas import tpu as pltpu


def _round_up(x, m):
    return (x + m - 1) // m * m


def _cdiv(a, b):
    return (a + b - 1) // b


def _mm(a, b, dtype):
    """MXU matmul with optional low-precision inputs, f32 accumulation."""
    return jnp.dot(a.astype(dtype), b.astype(dtype),
                   preferred_element_type=jnp.float32)


def nn_action_kernel(state_ref, rel_pad_ref, uav_ref, obst_ref, u_nom_ref,
                     w0_ref, b0_ref, w1_ref, b1_ref,
                     wf0x_ref, wf0u_ref, wf0r_ref, bf0_ref,
                     wf1_ref, bf1_ref, wf2_ref, bf2_ref,
                     out_ref, *, conv_dtype):
    state = state_ref[...]        # (TB, n_state)
    rel_pad = rel_pad_ref[...]    # (TB, n_state)
    u_nom = u_nom_ref[...]        # (TB, m_control)   -- NOT zero-padded

    b0 = b0_ref[...]
    b1 = b1_ref[...]
    # hoist the conv weight casts (used for both point clouds)
    w0c = w0_ref[...].astype(conv_dtype)
    w1c = w1_ref[...].astype(conv_dtype)

    def pooled_max(obs):
        """conv0 -> relu -> conv1 -> relu -> max over points, for one cloud."""
        tb, n_pts, c = obs.shape
        diff = (state[:, None, :] - obs).reshape(tb * n_pts, c)     # (TB*P, C)
        h0 = jnp.maximum(
            jnp.dot(diff.astype(conv_dtype), w0c,
                    preferred_element_type=jnp.float32) + b0, 0.0)  # (TB*P, 64)
        h1 = jnp.maximum(
            jnp.dot(h0.astype(conv_dtype), w1c,
                    preferred_element_type=jnp.float32) + b1, 0.0)  # (TB*P, 128)
        return jnp.max(h1.reshape(tb, n_pts, 128), axis=1)          # (TB, 128)

    # two clouds processed back-to-back; merged at the pool stage.
    xmax = jnp.maximum(pooled_max(uav_ref[...]), pooled_max(obst_ref[...]))

    # fc0: feature concat [xmax | u_nominal | rel_pad] as three accumulated
    # dots; the u_nominal dot uses its true (unpadded) K = m_control.
    f0 = _mm(xmax, wf0x_ref[...], jnp.float32)
    f0 = f0 + _mm(u_nom, wf0u_ref[...], jnp.float32)
    f0 = f0 + _mm(rel_pad, wf0r_ref[...], jnp.float32)
    f0 = jnp.maximum(f0 + bf0_ref[...], 0.0)                        # (TB, 128)

    f1 = jnp.maximum(_mm(f0, wf1_ref[...], jnp.float32) + bf1_ref[...], 0.0)
    f2 = jnp.tanh(_mm(f1, wf2_ref[...], jnp.float32) + bf2_ref[...]) * 5.0

    # residual add with the nominal control; narrow (m_control-wide) store.
    out_ref[...] = f2 + u_nom


def nn_action_forward(state, rel_pad, other_uav_obs, obstacles, u_nominal,
                      params, *, block_bs=2048, conv_dtype=jnp.bfloat16):
    bs, n_state = state.shape
    m_control = u_nominal.shape[1]
    p_uav = other_uav_obs.shape[1]
    p_obs = obstacles.shape[1]
    p_total = p_uav + p_obs

    # --- batch tile selection --------------------------------------------
    # cap tb so conv intermediates (~ tb*P*(64+128)*4 B) fit the VMEM budget
    max_rows_x_pts = 32768
    tb_cap = max(8, (max_rows_x_pts // max(p_total, 1)) // 8 * 8)
    block_bs = min(block_bs, tb_cap)

    num_tiles = _cdiv(bs, block_bs)
    if bs >= 16:
        num_tiles = max(num_tiles, 2)         # give both v7x TCs work
    if num_tiles > 1:
        num_tiles = _round_up(num_tiles, 2)
    tb = _round_up(_cdiv(bs, num_tiles), 8)   # balanced tiles -> minimal padding
    num_tiles = _cdiv(bs, tb)
    if num_tiles > 1:
        num_tiles = _round_up(num_tiles, 2)
    bs_p = num_tiles * tb

    pad = bs_p - bs
    if pad:
        state = jnp.pad(state, ((0, pad), (0, 0)))
        rel_pad = jnp.pad(rel_pad, ((0, pad), (0, 0)))
        other_uav_obs = jnp.pad(other_uav_obs, ((0, pad), (0, 0), (0, 0)))
        obstacles = jnp.pad(obstacles, ((0, pad), (0, 0), (0, 0)))
        u_nominal = jnp.pad(u_nominal, ((0, pad), (0, 0)))

    # split fc0 weight along its input rows: [xmax | u_nominal | rel_pad]
    wf0 = params["wf0"]
    wf0_x = wf0[:128]
    wf0_u = wf0[128:128 + m_control]
    wf0_r = wf0[128 + m_control:]

    data = (state, rel_pad, other_uav_obs, obstacles, u_nominal)
    weights = (params["w0"], params["b0"], params["w1"], params["b1"],
               wf0_x, wf0_u, wf0_r, params["bf0"],
               params["wf1"], params["bf1"], params["wf2"], params["bf2"])

    data_specs = [
        pl.BlockSpec((tb, n_state), lambda i: (i, 0)),               # state
        pl.BlockSpec((tb, n_state), lambda i: (i, 0)),               # rel_pad
        pl.BlockSpec((tb, p_uav, n_state), lambda i: (i, 0, 0)),     # other UAVs
        pl.BlockSpec((tb, p_obs, n_state), lambda i: (i, 0, 0)),     # obstacles
        pl.BlockSpec((tb, m_control), lambda i: (i, 0)),             # u_nominal
    ]
    # weights/biases: constant index_map -> resident in VMEM across grid steps
    weight_specs = [pl.BlockSpec(w.shape, lambda i: (0, 0)) for w in weights]

    flops = (2 * bs_p * p_total * (n_state * 64 + 64 * 128)
             + 2 * bs_p * ((128 + m_control + n_state) * 128
                           + 128 * 64 + 64 * m_control))
    bytes_accessed = (sum(int(a.size) * a.dtype.itemsize for a in data + weights)
                      + bs_p * m_control * 4)

    kernel = functools.partial(nn_action_kernel, conv_dtype=conv_dtype)

    out = pl.pallas_call(
        kernel,
        out_shape=jax.ShapeDtypeStruct((bs_p, m_control), jnp.float32),
        grid=(num_tiles,),
        in_specs=data_specs + weight_specs,
        out_specs=pl.BlockSpec((tb, m_control), lambda i: (i, 0)),
        compiler_params=pltpu.CompilerParams(
            dimension_semantics=("parallel",),
            vmem_limit_bytes=48 * 1024 * 1024),
        cost_estimate=pl.CostEstimate(
            flops=int(flops),
            transcendentals=int(bs_p * m_control),
            bytes_accessed=int(bytes_accessed)),
    )(*data, *weights)

    return out[:bs]


def init_params(key, n_state, m_control):
    """PyTorch-style uniform(-1/sqrt(fan_in), 1/sqrt(fan_in)) init, deterministic."""
    def linear(k, fan_in, fan_out):
        k1, k2 = jax.random.split(k)
        bound = 1.0 / float(fan_in) ** 0.5
        w = jax.random.uniform(k1, (fan_in, fan_out), jnp.float32, -bound, bound)
        b = jax.random.uniform(k2, (1, fan_out), jnp.float32, -bound, bound)
        return w, b

    keys = jax.random.split(key, 5)
    params = {}
    params["w0"], params["b0"] = linear(keys[0], n_state, 64)        # conv0 (1x1)
    params["w1"], params["b1"] = linear(keys[1], 64, 128)            # conv1 (1x1)
    params["wf0"], params["bf0"] = linear(keys[2], 128 + m_control + n_state, 128)
    params["wf1"], params["bf1"] = linear(keys[3], 128, 64)
    params["wf2"], params["bf2"] = linear(keys[4], 64, m_control)
    return params


def reference_forward(state, rel_pad, other_uav_obs, obstacles, u_nominal, params):
    """Pure-JAX f32 reference mirroring the PyTorch forward."""
    diff_other = state[:, None, :] - other_uav_obs
    diff_obst = state[:, None, :] - obstacles
    x = jnp.concatenate([diff_other, diff_obst], axis=1)
    h0 = jax.nn.relu(x @ params["w0"] + params["b0"][0])
    h1 = jax.nn.relu(h0 @ params["w1"] + params["b1"][0])
    xmax = jnp.max(h1, axis=1)
    feat = jnp.concatenate([xmax, u_nominal, rel_pad], axis=1)
    f0 = jax.nn.relu(feat @ params["wf0"] + params["bf0"][0])
    f1 = jax.nn.relu(f0 @ params["wf1"] + params["bf1"][0])
    f2 = jnp.tanh(f1 @ params["wf2"] + params["bf2"][0]) * 5.0
    return f2 + u_nominal


if __name__ == "__main__":
    bs, n_state, m_control = 2, 8, 4
    num_other, k_obstacle = 4, 4

    key = jax.random.PRNGKey(0)
    ks = jax.random.split(key, 6)
    state = jax.random.normal(ks[0], (bs, n_state), jnp.float32)
    rel_pad = jax.random.normal(ks[1], (bs, n_state), jnp.float32)
    other_uav_obs = jax.random.normal(ks[2], (bs, num_other, n_state), jnp.float32)
    obstacles = jax.random.normal(ks[3], (bs, k_obstacle, n_state), jnp.float32)
    u_nominal = jax.random.normal(ks[4], (bs, m_control), jnp.float32)
    params = init_params(ks[5], n_state, m_control)

    u_ref = reference_forward(state, rel_pad, other_uav_obs, obstacles,
                              u_nominal, params)

    # exact-semantics check: pure-f32 MXU path vs the PyTorch-equivalent forward
    u_f32 = nn_action_forward(state, rel_pad, other_uav_obs, obstacles,
                              u_nominal, params, conv_dtype=jnp.float32)
    u_f32 = jax.block_until_ready(u_f32)
    assert u_f32.shape == (bs, m_control)
    assert jnp.allclose(u_f32, u_ref, atol=1e-3, rtol=1e-3), "f32 mismatch vs reference"

    # fast path: bf16 conv matmul inputs with f32 accumulation (default config);
    # validated against the f32 reference at a bf16-appropriate tolerance.
    u_bf16 = nn_action_forward(state, rel_pad, other_uav_obs, obstacles,
                               u_nominal, params, conv_dtype=jnp.bfloat16)
    u_bf16 = jax.block_until_ready(u_bf16)
    assert u_bf16.shape == (bs, m_control)
    assert jnp.allclose(u_bf16, u_ref, atol=5e-2, rtol=5e-2), "bf16 mismatch vs reference"

    print("KERNEL_OK")
</pallas_src>

<mosaic_0001>
module attributes {stable_mosaic.version = 11 : i64} {
  func.func @nn_action_kernel(%arg0: i32, %arg1: memref<8x8xf32, #tpu.memory_space<vmem>>, %arg2: memref<8x8xf32, #tpu.memory_space<vmem>>, %arg3: memref<8x4x8xf32, #tpu.memory_space<vmem>>, %arg4: memref<8x4x8xf32, #tpu.memory_space<vmem>>, %arg5: memref<8x4xf32, #tpu.memory_space<vmem>>, %arg6: memref<8x64xf32, #tpu.memory_space<vmem>>, %arg7: memref<1x64xf32, #tpu.memory_space<vmem>>, %arg8: memref<64x128xf32, #tpu.memory_space<vmem>>, %arg9: memref<1x128xf32, #tpu.memory_space<vmem>>, %arg10: memref<128x128xf32, #tpu.memory_space<vmem>>, %arg11: memref<4x128xf32, #tpu.memory_space<vmem>>, %arg12: memref<8x128xf32, #tpu.memory_space<vmem>>, %arg13: memref<1x128xf32, #tpu.memory_space<vmem>>, %arg14: memref<128x64xf32, #tpu.memory_space<vmem>>, %arg15: memref<1x64xf32, #tpu.memory_space<vmem>>, %arg16: memref<64x4xf32, #tpu.memory_space<vmem>>, %arg17: memref<1x4xf32, #tpu.memory_space<vmem>>, %arg18: memref<8x4xf32, #tpu.memory_space<vmem>>) attributes {dimension_semantics = [#tpu.dimension_semantics<parallel>], iteration_bounds = array<i64: 1>, scalar_prefetch = 0 : i64, scratch_operands = 0 : i64, tpu.core_type = #tpu.core_type<tc>, window_params = [{transform_indices = @transform_0, window_bounds = array<i64: 8, 8>}, {transform_indices = @transform_1, window_bounds = array<i64: 8, 8>}, {transform_indices = @transform_2, window_bounds = array<i64: 8, 4, 8>}, {transform_indices = @transform_3, window_bounds = array<i64: 8, 4, 8>}, {transform_indices = @transform_4, window_bounds = array<i64: 8, 4>}, {pipeline_mode = #tpu.pipeline_mode<synchronous>, transform_indices = @transform_5, window_bounds = array<i64: 8, 64>}, {pipeline_mode = #tpu.pipeline_mode<synchronous>, transform_indices = @transform_6, window_bounds = array<i64: 1, 64>}, {pipeline_mode = #tpu.pipeline_mode<synchronous>, transform_indices = @transform_7, window_bounds = array<i64: 64, 128>}, {pipeline_mode = #tpu.pipeline_mode<synchronous>, transform_indices = @transform_8, window_bounds = array<i64: 1, 128>}, {pipeline_mode = #tpu.pipeline_mode<synchronous>, transform_indices = @transform_9, window_bounds = array<i64: 128, 128>}, {pipeline_mode = #tpu.pipeline_mode<synchronous>, transform_indices = @transform_10, window_bounds = array<i64: 4, 128>}, {pipeline_mode = #tpu.pipeline_mode<synchronous>, transform_indices = @transform_11, window_bounds = array<i64: 8, 128>}, {pipeline_mode = #tpu.pipeline_mode<synchronous>, transform_indices = @transform_12, window_bounds = array<i64: 1, 128>}, {pipeline_mode = #tpu.pipeline_mode<synchronous>, transform_indices = @transform_13, window_bounds = array<i64: 128, 64>}, {pipeline_mode = #tpu.pipeline_mode<synchronous>, transform_indices = @transform_14, window_bounds = array<i64: 1, 64>}, {pipeline_mode = #tpu.pipeline_mode<synchronous>, transform_indices = @transform_15, window_bounds = array<i64: 64, 4>}, {pipeline_mode = #tpu.pipeline_mode<synchronous>, transform_indices = @transform_16, window_bounds = array<i64: 1, 4>}, {transform_indices = @transform_17, window_bounds = array<i64: 8, 4>}]} {
    %c0 = arith.constant 0 : index
    %c0_0 = arith.constant 0 : index
    %0 = vector.load %arg1[%c0, %c0_0] : memref<8x8xf32, #tpu.memory_space<vmem>>, vector<8x8xf32>
    %c0_1 = arith.constant 0 : index
    %c0_2 = arith.constant 0 : index
    %1 = vector.load %arg2[%c0_1, %c0_2] : memref<8x8xf32, #tpu.memory_space<vmem>>, vector<8x8xf32>
    %c0_3 = arith.constant 0 : index
    %c0_4 = arith.constant 0 : index
    %2 = vector.load %arg5[%c0_3, %c0_4] : memref<8x4xf32, #tpu.memory_space<vmem>>, vector<8x4xf32>
    %c0_5 = arith.constant 0 : index
    %c0_6 = arith.constant 0 : index
    %3 = vector.load %arg7[%c0_5, %c0_6] : memref<1x64xf32, #tpu.memory_space<vmem>>, vector<1x64xf32>
    %c0_7 = arith.constant 0 : index
    %c0_8 = arith.constant 0 : index
    %4 = vector.load %arg9[%c0_7, %c0_8] : memref<1x128xf32, #tpu.memory_space<vmem>>, vector<1x128xf32>
    %c0_9 = arith.constant 0 : index
    %c0_10 = arith.constant 0 : index
    %5 = vector.load %arg6[%c0_9, %c0_10] : memref<8x64xf32, #tpu.memory_space<vmem>>, vector<8x64xf32>
    %c0_11 = arith.constant 0 : index
    %c0_12 = arith.constant 0 : index
    %6 = vector.load %arg8[%c0_11, %c0_12] : memref<64x128xf32, #tpu.memory_space<vmem>>, vector<64x128xf32>
    %c0_13 = arith.constant 0 : index
    %c0_14 = arith.constant 0 : index
    %c0_15 = arith.constant 0 : index
    %7 = vector.load %arg3[%c0_13, %c0_14, %c0_15] : memref<8x4x8xf32, #tpu.memory_space<vmem>>, vector<8x4x8xf32>
    %8 = vector.shape_cast %0 : vector<8x8xf32> to vector<8x1x8xf32>
    %9 = vector.broadcast %8 : vector<8x1x8xf32> to vector<8x4x8xf32>
    %10 = arith.subf %9, %7 : vector<8x4x8xf32>
    %11 = vector.shape_cast %10 : vector<8x4x8xf32> to vector<32x8xf32>
    %cst = arith.constant dense<0.000000e+00> : vector<32x64xf32>
    %12 = tpu.matmul %11, %5, %cst {dimension_numbers = #tpu.dot_dimension_numbers<[1], [0], [0], [1], [0, 0, 1, 1], [], []>} : vector<32x8xf32>, vector<8x64xf32>, vector<32x64xf32> -> vector<32x64xf32>
    %13 = vector.broadcast %3 : vector<1x64xf32> to vector<32x64xf32>
    %14 = arith.addf %12, %13 : vector<32x64xf32>
    %cst_16 = arith.constant 0.000000e+00 : f32
    %15 = vector.broadcast %cst_16 : f32 to vector<32x64xf32>
    %16 = arith.maximumf %14, %15 : vector<32x64xf32>
    %cst_17 = arith.constant dense<0.000000e+00> : vector<32x128xf32>
    %17 = tpu.matmul %16, %6, %cst_17 {dimension_numbers = #tpu.dot_dimension_numbers<[1], [0], [0], [1], [0, 0, 1, 1], [], []>} : vector<32x64xf32>, vector<64x128xf32>, vector<32x128xf32> -> vector<32x128xf32>
    %18 = vector.broadcast %4 : vector<1x128xf32> to vector<32x128xf32>
    %19 = arith.addf %17, %18 : vector<32x128xf32>
    %cst_18 = arith.constant 0.000000e+00 : f32
    %20 = vector.broadcast %cst_18 : f32 to vector<32x128xf32>
    %21 = arith.maximumf %19, %20 : vector<32x128xf32>
    %22 = vector.shape_cast %21 : vector<32x128xf32> to vector<8x4x128xf32>
    %cst_19 = arith.constant dense<0xFF800000> : vector<8x128xf32>
    %23 = vector.multi_reduction <maximumf>, %22, %cst_19 [1] : vector<8x4x128xf32> to vector<8x128xf32>
    %c0_20 = arith.constant 0 : index
    %c0_21 = arith.constant 0 : index
    %c0_22 = arith.constant 0 : index
    %24 = vector.load %arg4[%c0_20, %c0_21, %c0_22] : memref<8x4x8xf32, #tpu.memory_space<vmem>>, vector<8x4x8xf32>
    %25 = vector.shape_cast %0 : vector<8x8xf32> to vector<8x1x8xf32>
    %26 = vector.broadcast %25 : vector<8x1x8xf32> to vector<8x4x8xf32>
    %27 = arith.subf %26, %24 : vector<8x4x8xf32>
    %28 = vector.shape_cast %27 : vector<8x4x8xf32> to vector<32x8xf32>
    %cst_23 = arith.constant dense<0.000000e+00> : vector<32x64xf32>
    %29 = tpu.matmul %28, %5, %cst_23 {dimension_numbers = #tpu.dot_dimension_numbers<[1], [0], [0], [1], [0, 0, 1, 1], [], []>} : vector<32x8xf32>, vector<8x64xf32>, vector<32x64xf32> -> vector<32x64xf32>
    %30 = vector.broadcast %3 : vector<1x64xf32> to vector<32x64xf32>
    %31 = arith.addf %29, %30 : vector<32x64xf32>
    %cst_24 = arith.constant 0.000000e+00 : f32
    %32 = vector.broadcast %cst_24 : f32 to vector<32x64xf32>
    %33 = arith.maximumf %31, %32 : vector<32x64xf32>
    %cst_25 = arith.constant dense<0.000000e+00> : vector<32x128xf32>
    %34 = tpu.matmul %33, %6, %cst_25 {dimension_numbers = #tpu.dot_dimension_numbers<[1], [0], [0], [1], [0, 0, 1, 1], [], []>} : vector<32x64xf32>, vector<64x128xf32>, vector<32x128xf32> -> vector<32x128xf32>
    %35 = vector.broadcast %4 : vector<1x128xf32> to vector<32x128xf32>
    %36 = arith.addf %34, %35 : vector<32x128xf32>
    %cst_26 = arith.constant 0.000000e+00 : f32
    %37 = vector.broadcast %cst_26 : f32 to vector<32x128xf32>
    %38 = arith.maximumf %36, %37 : vector<32x128xf32>
    %39 = vector.shape_cast %38 : vector<32x128xf32> to vector<8x4x128xf32>
    %cst_27 = arith.constant dense<0xFF800000> : vector<8x128xf32>
    %40 = vector.multi_reduction <maximumf>, %39, %cst_27 [1] : vector<8x4x128xf32> to vector<8x128xf32>
    %41 = arith.maximumf %23, %40 : vector<8x128xf32>
    %c0_28 = arith.constant 0 : index
    %c0_29 = arith.constant 0 : index
    %42 = vector.load %arg10[%c0_28, %c0_29] : memref<128x128xf32, #tpu.memory_space<vmem>>, vector<128x128xf32>
    %cst_30 = arith.constant dense<0.000000e+00> : vector<8x128xf32>
    %43 = tpu.matmul %41, %42, %cst_30 {dimension_numbers = #tpu.dot_dimension_numbers<[1], [0], [0], [1], [0, 0, 1, 1], [], []>} : vector<8x128xf32>, vector<128x128xf32>, vector<8x128xf32> -> vector<8x128xf32>
    %c0_31 = arith.constant 0 : index
    %c0_32 = arith.constant 0 : index
    %44 = vector.load %arg11[%c0_31, %c0_32] : memref<4x128xf32, #tpu.memory_space<vmem>>, vector<4x128xf32>
    %cst_33 = arith.constant dense<0.000000e+00> : vector<8x128xf32>
    %45 = tpu.matmul %2, %44, %cst_33 {dimension_numbers = #tpu.dot_dimension_numbers<[1], [0], [0], [1], [0, 0, 1, 1], [], []>} : vector<8x4xf32>, vector<4x128xf32>, vector<8x128xf32> -> vector<8x128xf32>
    %46 = arith.addf %43, %45 : vector<8x128xf32>
    %c0_34 = arith.constant 0 : index
    %c0_35 = arith.constant 0 : index
    %47 = vector.load %arg12[%c0_34, %c0_35] : memref<8x128xf32, #tpu.memory_space<vmem>>, vector<8x128xf32>
    %cst_36 = arith.constant dense<0.000000e+00> : vector<8x128xf32>
    %48 = tpu.matmul %1, %47, %cst_36 {dimension_numbers = #tpu.dot_dimension_numbers<[1], [0], [0], [1], [0, 0, 1, 1], [], []>} : vector<8x8xf32>, vector<8x128xf32>, vector<8x128xf32> -> vector<8x128xf32>
    %49 = arith.addf %46, %48 : vector<8x128xf32>
    %c0_37 = arith.constant 0 : index
    %c0_38 = arith.constant 0 : index
    %50 = vector.load %arg13[%c0_37, %c0_38] : memref<1x128xf32, #tpu.memory_space<vmem>>, vector<1x128xf32>
    %51 = vector.broadcast %50 : vector<1x128xf32> to vector<8x128xf32>
    %52 = arith.addf %49, %51 : vector<8x128xf32>
    %cst_39 = arith.constant 0.000000e+00 : f32
    %53 = vector.broadcast %cst_39 : f32 to vector<8x128xf32>
    %54 = arith.maximumf %52, %53 : vector<8x128xf32>
    %c0_40 = arith.constant 0 : index
    %c0_41 = arith.constant 0 : index
    %55 = vector.load %arg14[%c0_40, %c0_41] : memref<128x64xf32, #tpu.memory_space<vmem>>, vector<128x64xf32>
    %cst_42 = arith.constant dense<0.000000e+00> : vector<8x64xf32>
    %56 = tpu.matmul %54, %55, %cst_42 {dimension_numbers = #tpu.dot_dimension_numbers<[1], [0], [0], [1], [0, 0, 1, 1], [], []>} : vector<8x128xf32>, vector<128x64xf32>, vector<8x64xf32> -> vector<8x64xf32>
    %c0_43 = arith.constant 0 : index
    %c0_44 = arith.constant 0 : index
    %57 = vector.load %arg15[%c0_43, %c0_44] : memref<1x64xf32, #tpu.memory_space<vmem>>, vector<1x64xf32>
    %58 = vector.broadcast %57 : vector<1x64xf32> to vector<8x64xf32>
    %59 = arith.addf %56, %58 : vector<8x64xf32>
    %cst_45 = arith.constant 0.000000e+00 : f32
    %60 = vector.broadcast %cst_45 : f32 to vector<8x64xf32>
    %61 = arith.maximumf %59, %60 : vector<8x64xf32>
    %c0_46 = arith.constant 0 : index
    %c0_47 = arith.constant 0 : index
    %62 = vector.load %arg16[%c0_46, %c0_47] : memref<64x4xf32, #tpu.memory_space<vmem>>, vector<64x4xf32>
    %cst_48 = arith.constant dense<0.000000e+00> : vector<8x4xf32>
    %63 = tpu.matmul %61, %62, %cst_48 {dimension_numbers = #tpu.dot_dimension_numbers<[1], [0], [0], [1], [0, 0, 1, 1], [], []>} : vector<8x64xf32>, vector<64x4xf32>, vector<8x4xf32> -> vector<8x4xf32>
    %c0_49 = arith.constant 0 : index
    %c0_50 = arith.constant 0 : index
    %64 = vector.load %arg17[%c0_49, %c0_50] : memref<1x4xf32, #tpu.memory_space<vmem>>, vector<1x4xf32>
    %65 = vector.broadcast %64 : vector<1x4xf32> to vector<8x4xf32>
    %66 = arith.addf %63, %65 : vector<8x4xf32>
    %67 = math.tanh %66 : vector<8x4xf32>
    %cst_51 = arith.constant 5.000000e+00 : f32
    %68 = vector.broadcast %cst_51 : f32 to vector<8x4xf32>
    %69 = arith.mulf %67, %68 : vector<8x4xf32>
    %70 = arith.addf %69, %2 : vector<8x4xf32>
    %c0_52 = arith.constant 0 : index
    %c0_53 = arith.constant 0 : index
    %71 = vector.load %arg18[%c0_52, %c0_53] : memref<8x4xf32, #tpu.memory_space<vmem>>, vector<8x4xf32>
    tpu.vector_store %arg18[%c0_52, %c0_53], %70 {strides = array<i32>} : memref<8x4xf32, #tpu.memory_space<vmem>>, vector<8x4xf32>,
    return
  }
  func.func @transform_0(%arg0: i32) -> (i32, i32) {
    %c0_i32 = arith.constant 0 : i32
    %c0_i32_0 = arith.constant 0 : i32
    return %arg0, %c0_i32 : i32, i32
  }
  func.func @transform_1(%arg0: i32) -> (i32, i32) {
    %c0_i32 = arith.constant 0 : i32
    %c0_i32_0 = arith.constant 0 : i32
    return %arg0, %c0_i32 : i32, i32
  }
  func.func @transform_2(%arg0: i32) -> (i32, i32, i32) {
    %c0_i32 = arith.constant 0 : i32
    %c0_i32_0 = arith.constant 0 : i32
    %c0_i32_1 = arith.constant 0 : i32
    return %arg0, %c0_i32, %c0_i32_0 : i32, i32, i32
  }
  func.func @transform_3(%arg0: i32) -> (i32, i32, i32) {
    %c0_i32 = arith.constant 0 : i32
    %c0_i32_0 = arith.constant 0 : i32
    %c0_i32_1 = arith.constant 0 : i32
    return %arg0, %c0_i32, %c0_i32_0 : i32, i32, i32
  }
  func.func @transform_4(%arg0: i32) -> (i32, i32) {
    %c0_i32 = arith.constant 0 : i32
    %c0_i32_0 = arith.constant 0 : i32
    return %arg0, %c0_i32 : i32, i32
  }
  func.func @transform_5(%arg0: i32) -> (i32, i32) {
    %c0_i32 = arith.constant 0 : i32
    %c0_i32_0 = arith.constant 0 : i32
    %c0_i32_1 = arith.constant 0 : i32
    return %c0_i32, %c0_i32_0 : i32, i32
  }
  func.func @transform_6(%arg0: i32) -> (i32, i32) {
    %c0_i32 = arith.constant 0 : i32
    %c0_i32_0 = arith.constant 0 : i32
    %c0_i32_1 = arith.constant 0 : i32
    return %c0_i32, %c0_i32_0 : i32, i32
  }
  func.func @transform_7(%arg0: i32) -> (i32, i32) {
    %c0_i32 = arith.constant 0 : i32
    %c0_i32_0 = arith.constant 0 : i32
    %c0_i32_1 = arith.constant 0 : i32
    return %c0_i32, %c0_i32_0 : i32, i32
  }
  func.func @transform_8(%arg0: i32) -> (i32, i32) {
    %c0_i32 = arith.constant 0 : i32
    %c0_i32_0 = arith.constant 0 : i32
    %c0_i32_1 = arith.constant 0 : i32
    return %c0_i32, %c0_i32_0 : i32, i32
  }
  func.func @transform_9(%arg0: i32) -> (i32, i32) {
    %c0_i32 = arith.constant 0 : i32
    %c0_i32_0 = arith.constant 0 : i32
    %c0_i32_1 = arith.constant 0 : i32
    return %c0_i32, %c0_i32_0 : i32, i32
  }
  func.func @transform_10(%arg0: i32) -> (i32, i32) {
    %c0_i32 = arith.constant 0 : i32
    %c0_i32_0 = arith.constant 0 : i32
    %c0_i32_1 = arith.constant 0 : i32
    return %c0_i32, %c0_i32_0 : i32, i32
  }
  func.func @transform_11(%arg0: i32) -> (i32, i32) {
    %c0_i32 = arith.constant 0 : i32
    %c0_i32_0 = arith.constant 0 : i32
    %c0_i32_1 = arith.constant 0 : i32
    return %c0_i32, %c0_i32_0 : i32, i32
  }
  func.func @transform_12(%arg0: i32) -> (i32, i32) {
    %c0_i32 = arith.constant 0 : i32
    %c0_i32_0 = arith.constant 0 : i32
    %c0_i32_1 = arith.constant 0 : i32
    return %c0_i32, %c0_i32_0 : i32, i32
  }
  func.func @transform_13(%arg0: i32) -> (i32, i32) {
    %c0_i32 = arith.constant 0 : i32
    %c0_i32_0 = arith.constant 0 : i32
    %c0_i32_1 = arith.constant 0 : i32
    return %c0_i32, %c0_i32_0 : i32, i32
  }
  func.func @transform_14(%arg0: i32) -> (i32, i32) {
    %c0_i32 = arith.constant 0 : i32
    %c0_i32_0 = arith.constant 0 : i32
    %c0_i32_1 = arith.constant 0 : i32
    return %c0_i32, %c0_i32_0 : i32, i32
  }
  func.func @transform_15(%arg0: i32) -> (i32, i32) {
    %c0_i32 = arith.constant 0 : i32
    %c0_i32_0 = arith.constant 0 : i32
    %c0_i32_1 = arith.constant 0 : i32
    return %c0_i32, %c0_i32_0 : i32, i32
  }
  func.func @transform_16(%arg0: i32) -> (i32, i32) {
    %c0_i32 = arith.constant 0 : i32
    %c0_i32_0 = arith.constant 0 : i32
    %c0_i32_1 = arith.constant 0 : i32
    return %c0_i32, %c0_i32_0 : i32, i32
  }
  func.func @transform_17(%arg0: i32) -> (i32, i32) {
    %c0_i32 = arith.constant 0 : i32
    %c0_i32_0 = arith.constant 0 : i32
    return %arg0, %c0_i32 : i32, i32
  }
}

</mosaic_0001>

<bundles_post_ra>
// kernel: tpu_custom_call.1
= control target key start
LH: loop header
LB: loop body
LE: loop exit
PB: predicated region body
PF: predicated region fallthrough
CT: control target
= control target key end

     0   :  { %s2199_s0 = inlined_call_operand.hbm [shape: f32[8,8], index: 0, kind: input, shape index: {}]   ;;  %s2200_s1 = inlined_call_operand.hbm [shape: f32[8,8], index: 1, kind: input, shape index: {}]   ;;  %s2201_s2 = inlined_call_operand.vmem [shape: f32[8,4,8], index: 2, kind: input, shape index: {}]   ;;  %s2202_s3 = inlined_call_operand.hbm [shape: f32[8,4,8], index: 3, kind: input, shape index: {}]   ;;  %s2203_s4 = inlined_call_operand.vmem [shape: f32[8,4], index: 4, kind: input, shape index: {}]   ;;  %s2204_s5 = inlined_call_operand.hbm [shape: f32[8,64], index: 5, kind: input, shape index: {}]   ;;  %s2205_s6 = inlined_call_operand.vmem [shape: f32[1,64], index: 6, kind: input, shape index: {}]   ;;  %s2206_s7 = inlined_call_operand.vmem [shape: f32[64,128], index: 7, kind: input, shape index: {}]   ;;  %s2207_s8 = inlined_call_operand.hbm [shape: f32[1,128], index: 8, kind: input, shape index: {}]   ;;  %s2208_s9 = inlined_call_operand.vmem [shape: f32[128,128], index: 9, kind: input, shape index: {}]   ;;  %s2209_s10 = inlined_call_operand.vmem [shape: f32[4,128], index: 10, kind: input, shape index: {}]   ;;  %s2210_s11 = inlined_call_operand.hbm [shape: f32[8,128], index: 11, kind: input, shape index: {}]   ;;  %s2211_s12 = inlined_call_operand.hbm [shape: f32[1,128], index: 12, kind: input, shape index: {}]   ;;  %s2212_s13 = inlined_call_operand.vmem [shape: f32[128,64], index: 13, kind: input, shape index: {}]   ;;  %s2213_s14 = inlined_call_operand.hbm [shape: f32[1,64], index: 14, kind: input, shape index: {}]   ;;  %s2214_s15 = inlined_call_operand.vmem [shape: f32[64,4], index: 15, kind: input, shape index: {}]   ;;  %s2215_s16 = inlined_call_operand.vmem [shape: f32[1,4], index: 16, kind: input, shape index: {}]   ;;  %s2216_s17 = inlined_call_operand.vmem [shape: f32[8,4], index: 17, kind: output, shape index: {}]  }
   0x1   :  { %2217 = sst [smem:[#allocation20_spill]] %s2199_s0 }
   0x2   :  { %2218 = sst [smem:[#allocation21_spill]] %s2200_s1 }
   0x3   :  { %22 = vsyncpa [#allocation3], 0 }
   0x4   :  { %23 = vsyncpa [#allocation5], 0 }
   0x5   :  { %24 = vsyncpa [#allocation8], 0 }
   0x6   :  { %25 = vsyncpa [#allocation11], 0 }
   0x7   :  { %26 = vsyncpa [#allocation14], 0  ;;  %s1783_s24 = smov [#allocation4]   ;;  %s1784_s26 = smov [#allocation7]  }
   0x8   :  { %s43_s25 = sshll.u32 %s1783_s24, 4  ;;  %s69_s27 = sshll.u32 %s1784_s26, 4  ;;  %s44_s25 = int_to_ptr.vmem [resolvable:$true] %s43_s25  ;;  %s70_s27 = int_to_ptr.vmem [resolvable:$true] %s69_s27 }
   0x9   :  { %s1621_s28 = scalar_lea.vmem %s44_s25, 128  ;;  %p1626_p1 = scmp.lt.s32.totalorder %s44_s25, %s44_s25 }
   0xa   :  { %p1622_p0 = scmp.ne.s32.totalorder %s44_s25, %s1621_s28  ;;  %p1627_p2 = scmp.lt.s32.totalorder %s1621_s28, %s1621_s28 }
   0xc   :  { %p1628_p3 = por %p1627_p2, %p1626_p1 }
   0xe   :  { %p1629_p4 = pnand %p1628_p3, %p1622_p0 }
  0x10   :  { %1632 = shalt.err (!%p1629_p4)
}
  0x11   :  { %s2219_s30 = sld [smem:[#allocation21_spill]]  ;;  %s1641_s18 = scalar_lea.vmem %s70_s27, 128 }
  0x12   :  { %p1642_p5 = scmp.ne.s32.totalorder %s70_s27, %s1641_s18  ;;  %p1646_p6 = scmp.lt.s32.totalorder %s70_s27, %s70_s27 }
  0x13   :  { %p1647_p7 = scmp.lt.s32.totalorder %s1641_s18, %s1641_s18 }
  0x15   :  { %p1648_p8 = por %p1647_p7, %p1646_p6 }
  0x17   :  { %46 = dma.hbm_to_vmem [thread:$0]  %s2219_s30, 128, %s44_s25, [#allocation5]  }
  0x18   :  { %p1649_p9 = pnand %p1648_p8, %p1642_p5 }
  0x1a   :  { %1652 = shalt.err (!%p1649_p9)
}
  0x1b   :  { %72 = dma.hbm_to_vmem [thread:$0]  %s2204_s5, 128, %s70_s27, [#allocation8]  }
  0x1c   :  { %s1785_s20 = smov [#allocation10]   ;;  %s1786_s22 = smov [#allocation2]  }
  0x1d   :  { %s97_s21 = sshll.u32 %s1785_s20, 4  ;;  %s33_s23 = sshll.u32 %s1786_s22, 4  ;;  %s98_s21 = int_to_ptr.vmem [resolvable:$true] %s97_s21  ;;  %s34_s23 = int_to_ptr.vmem [resolvable:$true] %s33_s23 }
  0x1e   :  { %s1661_s24 = scalar_lea.vmem %s98_s21, 128  ;;  %p1666_p11 = scmp.lt.s32.totalorder %s98_s21, %s98_s21 }
  0x1f   :  { %p1662_p10 = scmp.ne.s32.totalorder %s98_s21, %s1661_s24  ;;  %p1667_p12 = scmp.lt.s32.totalorder %s1661_s24, %s1661_s24 }
  0x21   :  { %p1668_p13 = por %p1667_p12, %p1666_p11 }
  0x23   :  { %p1669_p0 = pnand %p1668_p13, %p1662_p10 }
  0x25   :  { %1672 = shalt.err (!%p1669_p0)
}
  0x26   :  { %100 = dma.hbm_to_vmem [thread:$0]  %s2210_s11, 128, %s98_s21, [#allocation11]  }
  0x27   :  { %s1681_s28 = scalar_lea.vmem %s34_s23, 128  ;;  %p1686_p2 = scmp.lt.s32.totalorder %s34_s23, %s34_s23 }
  0x28   :  { %p1682_p1 = scmp.ne.s32.totalorder %s34_s23, %s1681_s28  ;;  %p1687_p3 = scmp.lt.s32.totalorder %s1681_s28, %s1681_s28 }
  0x2a   :  { %p1688_p4 = por %p1687_p3, %p1686_p2 }
  0x2c   :  { %p1689_p5 = pnand %p1688_p4, %p1682_p1 }
  0x2e   :  { %1692 = shalt.err (!%p1689_p5)
}
  0x2f   :  { %s2220_s29 = sld [smem:[#allocation20_spill]]  ;;  %s1787_s0 = smov [#allocation6]  }
  0x30   :  { %s54_s30 = sshll.u32 %s1787_s0, 4  ;;  %s55_s30 = int_to_ptr.vmem [resolvable:$true] %s54_s30 }
  0x31   :  { %s1701_s18 = scalar_lea.vmem %s55_s30, 512  ;;  %p1706_p7 = scmp.lt.s32.totalorder %s55_s30, %s55_s30 }
  0x32   :  { %p1702_p6 = scmp.ne.s32.totalorder %s55_s30, %s1701_s18  ;;  %p1707_p8 = scmp.lt.s32.totalorder %s1701_s18, %s1701_s18 }
  0x34   :  { %p1708_p9 = por %p1707_p8, %p1706_p7 }
  0x35   :  { %36 = dma.hbm_to_vmem [thread:$0]  %s2220_s29, 128, %s34_s23, [#allocation3]  }
  0x36   :  { %p1709_p10 = pnand %p1708_p9, %p1702_p6 }
  0x38   :  { %1712 = shalt.err (!%p1709_p10)
}
  0x39   :  { %s1788_s11 = smov 64   ;;  %s1789_s19 = smov 4  }
  0x3a   :  { %60 = dma.hbm_to_vmem [thread:$0]  %s2202_s3, 512, %s55_s30, [#allocation5], %s1788_s11, %s1788_s11, %s1789_s19  }
  0x3b   :  { %s1790_s21 = smov [#allocation9]   ;;  %s1791_s23 = smov [#allocation12]  }
  0x3c   :  { %s83_s22 = sshll.u32 %s1790_s21, 4  ;;  %s107_s24 = sshll.u32 %s1791_s23, 4  ;;  %s84_s22 = int_to_ptr.vmem [resolvable:$true] %s83_s22  ;;  %s108_s24 = int_to_ptr.vmem [resolvable:$true] %s107_s24 }
  0x3d   :  { %s1721_s25 = scalar_lea.vmem %s84_s22, 16  ;;  %s1725_s26 = scalar_lea.vmem %s84_s22, 32 }
  0x3e   :  { %p1722_p11 = scmp.ne.s32.totalorder %s84_s22, %s1721_s25  ;;  %p1726_p12 = scmp.lt.s32.totalorder %s84_s22, %s84_s22 }
  0x3f   :  { %p1727_p13 = scmp.lt.s32.totalorder %s1725_s26, %s1721_s25 }
  0x41   :  { %p1728_p0 = por %p1727_p13, %p1726_p12 }
  0x43   :  { %p1729_p1 = pnand %p1728_p0, %p1722_p11 }
  0x45   :  { %1732 = shalt.err (!%p1729_p1)
}
  0x46   :  { %86 = dma.hbm_to_vmem [thread:$0]  %s2207_s8, 16, %s84_s22, [#allocation8]  }
  0x47   :  { %s1741_s27 = scalar_lea.vmem %s108_s24, 16  ;;  %s1745_s3 = scalar_lea.vmem %s108_s24, 32 }
  0x48   :  { %p1742_p2 = scmp.ne.s32.totalorder %s108_s24, %s1741_s27  ;;  %p1746_p3 = scmp.lt.s32.totalorder %s108_s24, %s108_s24 }
  0x49   :  { %p1747_p4 = scmp.lt.s32.totalorder %s1745_s3, %s1741_s27 }
  0x4b   :  { %p1748_p5 = por %p1747_p4, %p1746_p3 }
  0x4d   :  { %p1749_p6 = pnand %p1748_p5, %p1742_p2 }
  0x4f   :  { %1752 = shalt.err (!%p1749_p6)
}
  0x50   :  { %110 = dma.hbm_to_vmem [thread:$0]  %s2211_s12, 16, %s108_s24, [#allocation11]  }
  0x51   :  { %s1792_s30 = smov [#allocation13]  }
  0x52   :  { %s119_s18 = sshll.u32 %s1792_s30, 4  ;;  %s120_s18 = int_to_ptr.vmem [resolvable:$true] %s119_s18 }
  0x53   :  { %s1761_s11 = scalar_lea.vmem %s120_s18, 16  ;;  %s1765_s19 = scalar_lea.vmem %s120_s18, 32 }
  0x54   :  { %p1762_p7 = scmp.ne.s32.totalorder %s120_s18, %s1761_s11  ;;  %p1766_p8 = scmp.lt.s32.totalorder %s120_s18, %s120_s18 }
  0x55   :  { %p1767_p9 = scmp.lt.s32.totalorder %s1765_s19, %s1761_s11 }
  0x57   :  { %p1768_p10 = por %p1767_p9, %p1766_p8 }
  0x59   :  { %p1769_p11 = pnand %p1768_p10, %p1762_p7 }
  0x5b   :  { %1772 = shalt.err (!%p1769_p11)
}
  0x5c   :  { %122 = dma.hbm_to_vmem [thread:$0]  %s2213_s14, 16, %s120_s18, [#allocation14]  }
  0x5d   :  { %1773 = dma.done.wait [#allocation3], 128  }
  0x5e   :  { %1774 = vsyncadd [#allocation3], 4294967168 }
  0x5f   :  { %1775 = dma.done.wait [#allocation5], 640  }
  0x60   :  { %1776 = vsyncadd [#allocation5], 4294966656 }
  0x61   :  { %1777 = dma.done.wait [#allocation8], 144  }
  0x62   :  { %1778 = vsyncadd [#allocation8], 4294967152 }
  0x63   :  { %1779 = dma.done.wait [#allocation11], 144  }
  0x64   :  { %1780 = vsyncadd [#allocation11], 4294967152 }
  0x65   :  { %1781 = dma.done.wait [#allocation14], 16  }
  0x66   :  { %1782 = vsyncadd [#allocation14], 4294967280  ;;  %v178_v0 = vlaneseq  ;;  %v1793_v1 = vmov 1966171168   ;;  %v156_v6 = vld [vmem:[#allocation7] sm:$0xff]  ;;  %v151_v7 = vld [vmem:[#allocation2] sm:$0xff] }
  0x67   :  { %v176_v2 = vunpack.c.l.s4 %v1793_v1  ;;  %1438 = vmatprep.subr.mxu1 %v156_v6  ;;  %1468 = vmatprep.subr.mxu0 %v156_v6  ;;  %v174_v8 = vcombine.high %v151_v7, %v151_v7  ;;  %v165_v14 = vld [vmem:[%s2201_s2] sm:$0xf]  ;;  %v564_v15 = vld [vmem:[#allocation6] sm:$0xf]  ;;  %v166_v20 = vld [vmem:[%s2201_s2 + $0x4] sm:$0xf] }
  0x68   :  { %v179_v3 = vshrl.u32 %v178_v0, 7  ;;  %1439 = vmatpush3.msra.mxu1 %v156_v6  ;;  %1469 = vmatpush3.msra.mxu0 %v156_v6  ;;  %v565_v21 = vld [vmem:[#allocation6 + $0x4] sm:$0xf]  ;;  %v164_v23 = vld [vmem:[%s2206_s7 + $0x38] sm:$0xff]  ;;  %v167_v28 = vld [vmem:[%s2201_s2 + $0x8] sm:$0xf] }
  0x69   :  { %v177_v4 = vunpack.c.0.s8 %v176_v2  ;;  %v566_v29 = vld [vmem:[#allocation6 + $0x8] sm:$0xf]  ;;  %v169_v30 = vld [vmem:[%s2201_s2 + $0x10] sm:$0xf]  ;;  %1446 = vmatprep.subr.mxu1 %v164_v23  ;;  %vm289_vm0 = vcmask 64512   ;;  %1476 = vmatprep.subr.mxu0 %v164_v23  ;;  %vm393_vm1 = vcmask 523264  }
  0x6a   :  { %v225_v10 = vsub.s32 0, %v179_v3  ;;  %v168_v31 = vld [vmem:[%s2201_s2 + $0xc] sm:$0xf]  ;;  %v567_v33 = vld [vmem:[#allocation6 + $0xc] sm:$0xf]  ;;  %vm507_vm2 = vcmask 1043456  }
  0x6b   :  { %v180_v5 = vsub.s32 %v177_v4, %v179_v3  ;;  %v170_v39 = vld [vmem:[%s2201_s2 + $0x14] sm:$0xf]  ;;  %v568_v40 = vld [vmem:[#allocation6 + $0x10] sm:$0xf]  ;;  %v569_v41 = vld [vmem:[#allocation6 + $0x14] sm:$0xf] }
  0x6c   :  { %v171_v54 = vld [vmem:[%s2201_s2 + $0x18] sm:$0xf]  ;;  %v570_v56 = vld [vmem:[#allocation6 + $0x18] sm:$0xf]  ;;  %v172_v59 = vld [vmem:[%s2201_s2 + $0x1c] sm:$0xf] }
  0x6d   :  { %v181_v9 = vrot.slane %v151_v7, %v180_v5  ;;  %v188_v11 = vrot.slane %v174_v8, %v180_v5  ;;  %v571_v61 = vld [vmem:[#allocation6 + $0x1c] sm:$0xf]  ;;  %v163_v3 = vld [vmem:[%s2206_s7 + $0x30] sm:$0xff]  ;;  %vm1795_vm3 = vmmov 0   ;;  %vm883_vm4 = vcmask 31744  }
  0x6e   :  { %v162_v8 = vld [vmem:[%s2206_s7 + $0x28] sm:$0xff]  ;;  %vm968_vm5 = vcmask 1041409   ;;  %vm970_vm6 = vcmask 1042434   ;;  %vm972_vm7 = vcmask 1043459   ;;  %vm974_vm8 = vcmask 1044484  }
  0x6f   :  { %v189_v12 = vcombine.high %v181_v9, %v181_v9  ;;  %v197_v13 = vrot.slane %v181_v9, %v180_v5  ;;  %v190_v19 = vcombine.high %v188_v11, %v188_v11  ;;  %v204_v22 = vrot.slane %v188_v11, %v180_v5  ;;  %v161_v9 = vld [vmem:[%s2206_s7 + $0x20] sm:$0xff]  ;;  %v159_v11 = vld [vmem:[%s2206_s7 + $0x10] sm:$0xff] }
  0x70   :  { %vm976_vm9 = vcmask 1045509   ;;  %vm978_vm10 = vcmask 1046534   ;;  %vm980_vm11 = vcmask 1047559  }
  0x71   :  { %v211_v16 = vrot.slane %v189_v12, %v180_v5  ;;  %v219_v17 = vcombine.high %v197_v13, %v197_v13  ;;  %v226_v18 = vrot.slane %v197_v13, %v225_v10  ;;  %v218_v34 = vrot.slane %v190_v19, %v180_v5  ;;  %v158_v12 = vld [vmem:[%s2206_s7 + $0x8] sm:$0xff]  ;;  %v157_v13 = vld [vmem:[%s2206_s7] sm:$0xff] }
  0x72   :  { %v242_v35 = vrot.slane %v204_v22, %v225_v10  ;;  %v220_v42 = vcombine.high %v204_v22, %v204_v22 }
  0x73   :  { %v221_v24 = vcombine.high %v211_v16, %v211_v16  ;;  %v230_v25 = vrot.slane %v211_v16, %v225_v10  ;;  %v263_v26 = vsub.f32 %v226_v18, %v165_v14  ;;  %v572_v27 = vsub.f32 %v226_v18, %v564_v15  ;;  %v1332_v15 = vld [vmem:[%s2205_s6] ss:$0 sm:$0xff] }
  0x74   :  { %v234_v32 = vrot.slane %v219_v17, %v225_v10  ;;  %v246_v45 = vrot.slane %v218_v34, %v225_v10  ;;  %v267_v46 = vsub.f32 %v242_v35, %v169_v30  ;;  %v576_v52 = vsub.f32 %v242_v35, %v568_v40  ;;  %v881_v40 = vld [vmem:[%s2208_s9 + $0x78] sm:$0xff] }
  0x75   :  { %v264_v36 = vsub.f32 %v230_v25, %v166_v20  ;;  %v573_v37 = vsub.f32 %v230_v25, %v565_v21  ;;  %v238_v38 = vrot.slane %v221_v24, %v225_v10  ;;  %v222_v55 = vcombine.high %v218_v34, %v218_v34 }
  0x76   :  { %v265_v43 = vsub.f32 %v234_v32, %v167_v28  ;;  %v574_v44 = vsub.f32 %v234_v32, %v566_v29  ;;  %v268_v51 = vsub.f32 %v246_v45, %v170_v39  ;;  %v577_v53 = vsub.f32 %v246_v45, %v569_v41  ;;  %v880_v41 = vld [vmem:[%s2208_s9 + $0x70] sm:$0xff] }
  0x77   :  { %v285_v47 = vcombine.low %v263_v26, %v264_v36  ;;  %v588_v48 = vcombine.low %v572_v27, %v573_v37  ;;  %v266_v49 = vsub.f32 %v238_v38, %v168_v31  ;;  %v575_v50 = vsub.f32 %v238_v38, %v567_v33  ;;  %v876_v45 = vld [vmem:[%s2208_s9 + $0x50] sm:$0xff] }
  0x78   :  { %v250_v60 = vrot.slane %v220_v42, %v225_v10  ;;  %v287_v62 = vcombine.low %v267_v46, %v268_v51  ;;  %v590_v63 = vcombine.low %v576_v52, %v577_v53  ;;  %v254_v0 = vrot.slane %v222_v55, %v225_v10  ;;  %v160_v10 = vld [vmem:[%s2206_s7 + $0x18] sm:$0xff]  ;;  %v879_v42 = vld [vmem:[%s2208_s9 + $0x68] sm:$0xff]  ;;  %v870_v51 = vld [vmem:[%s2208_s9 + $0x20] sm:$0xff] }
  0x79   :  { %1440 = vmatprep.mubr.msk.f32.mxu1 %vm289_vm0, %v285_v47  ;;  %1470 = vmatprep.mubr.msk.f32.mxu0 %vm289_vm0, %v588_v48  ;;  %v286_v57 = vcombine.low %v265_v43, %v266_v49  ;;  %v589_v58 = vcombine.low %v574_v44, %v575_v50  ;;  %v1794_v14 = vmov 0.0   ;;  %v878_v43 = vld [vmem:[%s2208_s9 + $0x60] sm:$0xff]  ;;  %v877_v44 = vld [vmem:[%s2208_s9 + $0x58] sm:$0xff]  ;;  %v875_v46 = vld [vmem:[%s2208_s9 + $0x48] sm:$0xff] }
  0x7a   :  { %v269_v1 = vsub.f32 %v250_v60, %v171_v54  ;;  %v578_v2 = vsub.f32 %v250_v60, %v570_v56  ;;  %v270_v4 = vsub.f32 %v254_v0, %v172_v59  ;;  %v579_v5 = vsub.f32 %v254_v0, %v571_v61  ;;  %v874_v47 = vld [vmem:[%s2208_s9 + $0x40] sm:$0xff]  ;;  %v873_v48 = vld [vmem:[%s2208_s9 + $0x38] sm:$0xff]  ;;  %v872_v49 = vld [vmem:[%s2208_s9 + $0x30] sm:$0xff] }
  0x7b   :  { %1441 = vmatmul.mubr.msk.f32.vlgmr.msra.gmra.mxu1 %vm289_vm0, %v286_v57  ;;  %1471 = vmatmul.mubr.msk.f32.vlgmr.msra.gmra.mxu0 %vm289_vm0, %v589_v58  ;;  %v871_v50 = vld [vmem:[%s2208_s9 + $0x28] sm:$0xff]  ;;  %v869_v52 = vld [vmem:[%s2208_s9 + $0x18] sm:$0xff]  ;;  %v882_v53 = vld [vmem:[%s2209_s10] sm:$0xf] }
  0x7c   :  { %1443 = vmatprep.mubr.msk.f32.mxu1 %vm289_vm0, %v287_v62  ;;  %1473 = vmatprep.mubr.msk.f32.mxu0 %vm289_vm0, %v590_v63  ;;  %v288_v6 = vcombine.low %v269_v1, %v270_v4  ;;  %v591_v7 = vcombine.low %v578_v2, %v579_v5  ;;  %v868_v54 = vld [vmem:[%s2208_s9 + $0x10] sm:$0xff]  ;;  %v2043_v55 = vld [vmem:[%s2203_s4] sm:$0xff]  ;;  %v867_v56 = vld [vmem:[%s2208_s9 + $0x8] sm:$0xff] }
  0x7d   :  { %1447 = vmatpush3.msra.mxu1 %v164_v23  ;;  %1477 = vmatpush3.msra.mxu0 %v164_v23  ;;  %v1053_v57 = vld [vmem:[#allocation10] sm:$0xff]  ;;  %v152_v59 = vld [vmem:[#allocation4] sm:$0xff]  ;;  %v1151_v61 = vld [vmem:[%s2212_s13 + $0x70] sm:$0xff] }
  0x7e   :  { %1448 = vmatprep.subr.mxu1 %v163_v3  ;;  %1478 = vmatprep.subr.mxu0 %v163_v3  ;;  %v866_v58 = vld [vmem:[%s2208_s9] sm:$0xff]  ;;  %v1152_v60 = vld [vmem:[%s2212_s13 + $0x78] sm:$0xff]  ;;  %v1150_v62 = vld [vmem:[%s2212_s13 + $0x68] sm:$0xff] }
  0x7f   :  { %1449 = vmatpush3.msra.mxu1 %v163_v3  ;;  %1479 = vmatpush3.msra.mxu0 %v163_v3  ;;  %v1149_v63 = vld [vmem:[%s2212_s13 + $0x60] sm:$0xff]  ;;  %v1148_v0 = vld [vmem:[%s2212_s13 + $0x58] sm:$0xff]  ;;  %v1147_v1 = vld [vmem:[%s2212_s13 + $0x50] sm:$0xff] }
  0x80   :  { %1444 = vmatmul.mubr.msk.f32.gmra.mxu1 %vm289_vm0, %v288_v6  ;;  %1474 = vmatmul.mubr.msk.f32.gmra.mxu0 %vm289_vm0, %v591_v7  ;;  %v1146_v2 = vld [vmem:[%s2212_s13 + $0x48] sm:$0xff]  ;;  %v1145_v3 = vld [vmem:[%s2212_s13 + $0x40] sm:$0xff]  ;;  %v1144_v4 = vld [vmem:[%s2212_s13 + $0x38] sm:$0xff] }
  0x81   :  { %1450 = vmatprep.subr.mxu1 %v162_v8  ;;  %1480 = vmatprep.subr.mxu0 %v162_v8  ;;  %v1143_v5 = vld [vmem:[%s2212_s13 + $0x30] sm:$0xff]  ;;  %v1142_v6 = vld [vmem:[%s2212_s13 + $0x28] sm:$0xff]  ;;  %v2109_v7 = vld [vmem:[#allocation9] ss:$0 sm:$0xff] }
  0x82   :  { %1451 = vmatpush3.msra.mxu1 %v162_v8  ;;  %1481 = vmatpush3.msra.mxu0 %v162_v8 }
  0x83   :  { %1452 = vmatprep.subr.mxu1 %v161_v9  ;;  %1482 = vmatprep.subr.mxu0 %v161_v9 }
  0x84   :  { %1453 = vmatpush3.msra.mxu1 %v161_v9  ;;  %1483 = vmatpush3.msra.mxu0 %v161_v9 }
  0x85   :  { %1454 = vmatprep.subr.mxu1 %v160_v10  ;;  %1484 = vmatprep.subr.mxu0 %v160_v10 }
  0x86   :  { %1455 = vmatpush3.msra.mxu1 %v160_v10  ;;  %1485 = vmatpush3.msra.mxu0 %v160_v10 }
  0x87   :  { %1456 = vmatprep.subr.mxu1 %v159_v11  ;;  %1486 = vmatprep.subr.mxu0 %v159_v11 }
  0x88   :  { %1457 = vmatpush3.msra.mxu1 %v159_v11  ;;  %1487 = vmatpush3.msra.mxu0 %v159_v11 }
  0x89   :  { %1458 = vmatprep.subr.mxu1 %v158_v12  ;;  %1488 = vmatprep.subr.mxu0 %v158_v12 }
  0x8a   :  { %1459 = vmatpush3.msra.mxu1 %v158_v12  ;;  %1489 = vmatpush3.msra.mxu0 %v158_v12 }
  0x8b   :  { %1460 = vmatprep.subr.mxu1 %v157_v13  ;;  %1490 = vmatprep.subr.mxu0 %v157_v13 }
  0x8c   :  { %1461 = vmatpush3.msra.mxu1 %v157_v13  ;;  %1491 = vmatpush3.msra.mxu0 %v157_v13 }
  0x8d   :  { %1503 = vmatprep.subr.mxu1 %v1794_v14  ;;  %1498 = vmatprep.subr.mxu0 %v1794_v14 }
 0x13b   :  { %v1442_v16 = vpop.f32.mrf.mxu1  ;;  %v1472_v17 = vpop.f32.mrf.mxu0 }
 0x13c   :  { %v370_v18 = vadd.f32 %v1442_v16, %v1332_v15  ;;  %v672_v19 = vadd.f32 %v1472_v17, %v1332_v15 }
 0x13d   :  { %v364_v20 = vpop.f32.mrf.mxu1  ;;  %v666_v21 = vpop.f32.mrf.mxu0 }
 0x13e   :  { %v365_v22 = vadd.f32 %v1332_v15, %v364_v20  ;;  %v667_v23 = vadd.f32 %v1332_v15, %v666_v21  ;;  %v384_v28 = vmax.f32 %v370_v18, 0.0  ;;  %v686_v29 = vmax.f32 %v672_v19, 0.0 }
 0x140   :  { %v383_v24 = vmax.f32 %v365_v22, 0.0  ;;  %v685_v25 = vmax.f32 %v667_v23, 0.0  ;;  %v1445_v26 = vpop.f32.mrf.mxu1  ;;  %v1475_v27 = vpop.f32.mrf.mxu0 }
 0x141   :  { %v380_v30 = vadd.f32 %v1445_v26, %v1332_v15  ;;  %v682_v31 = vadd.f32 %v1475_v27, %v1332_v15 }
 0x142   :  { %v374_v32 = vpop.f32.mrf.mxu1  ;;  %v676_v33 = vpop.f32.mrf.mxu0  ;;  %1462 = vmatprep.mubr.msk.f32.mxu1 %vm393_vm1, %v383_v24  ;;  %1492 = vmatprep.mubr.msk.f32.mxu0 %vm393_vm1, %v685_v25 }
 0x143   :  { %v375_v34 = vadd.f32 %v1332_v15, %v374_v32  ;;  %v677_v35 = vadd.f32 %v1332_v15, %v676_v33  ;;  %1463 = vmatmul.mubr.msk.f32.vlgmr.msra.gmra.mxu1 %vm393_vm1, %v384_v28  ;;  %1493 = vmatmul.mubr.msk.f32.vlgmr.msra.gmra.mxu0 %vm393_vm1, %v686_v29  ;;  %v386_v38 = vmax.f32 %v380_v30, 0.0  ;;  %v688_v39 = vmax.f32 %v682_v31, 0.0 }
 0x144   :  { %1504 = vmatpush3.msra.mxu1 %v881_v40  ;;  %1499 = vmatpush3.msk.msra.mxu0 %vm507_vm2, %v882_v53 }
 0x145   :  { %v385_v36 = vmax.f32 %v375_v34, 0.0  ;;  %v687_v37 = vmax.f32 %v677_v35, 0.0  ;;  %1505 = vmatprep.subr.mxu1 %v1794_v14  ;;  %1538 = vmatprep.subr.mxu0 %v1794_v14 }
 0x146   :  { %1506 = vmatpush3.msra.mxu1 %v880_v41 }
 0x147   :  { %1465 = vmatprep.mubr.msk.f32.mxu1 %vm393_vm1, %v385_v36  ;;  %1495 = vmatprep.mubr.msk.f32.mxu0 %vm393_vm1, %v687_v37 }
 0x148   :  { %1466 = vmatmul.mubr.msk.f32.gmra.mxu1 %vm393_vm1, %v386_v38  ;;  %1496 = vmatmul.mubr.msk.f32.gmra.mxu0 %vm393_vm1, %v688_v39 }
 0x149   :  { %1507 = vmatprep.subr.mxu1 %v1794_v14  ;;  %1500 = vmatprep.mubr.msk.f32.mxu0 %vm1795_vm3, %v1794_v14 }
 0x14a   :  { %1508 = vmatpush3.msra.mxu1 %v879_v42  ;;  %1535 = vmatprep.mubr.msk.f32.mxu1 %vm1795_vm3, %v1794_v14 }
 0x14b   :  { %1509 = vmatprep.subr.mxu1 %v1794_v14 }
 0x14c   :  { %1510 = vmatpush3.msra.mxu1 %v878_v43  ;;  %1501 = vmatmul.mubr.msk.f32.vlgmr.msra.gmra.mxu0 %vm883_vm4, %v2043_v55 }
 0x14d   :  { %1511 = vmatprep.subr.mxu1 %v1794_v14  ;;  %1539 = vmatpush3.msra.mxu0 %v1053_v57 }
 0x14e   :  { %1512 = vmatpush3.msra.mxu1 %v877_v44  ;;  %1540 = vmatprep.mubr.msk.f32.mxu0 %vm1795_vm3, %v1794_v14 }
 0x14f   :  { %1513 = vmatprep.subr.mxu1 %v1794_v14  ;;  %1543 = vmatprep.subr.mxu0 %v1794_v14 }
 0x150   :  { %1514 = vmatpush3.msra.mxu1 %v876_v45  ;;  %1541 = vmatmul.mubr.msk.f32.vlgmr.msra.gmra.mxu0 %vm289_vm0, %v152_v59 }
 0x151   :  { %1515 = vmatprep.subr.mxu1 %v1794_v14  ;;  %1544 = vmatpush3.msra.mxu0 %v1152_v60 }
 0x152   :  { %1516 = vmatpush3.msra.mxu1 %v875_v46  ;;  %1575 = vmatprep.mubr.msk.f32.mxu0 %vm1795_vm3, %v1794_v14 }
 0x153   :  { %1517 = vmatprep.subr.mxu1 %v1794_v14  ;;  %1545 = vmatprep.subr.mxu0 %v1794_v14 }
 0x154   :  { %1518 = vmatpush3.msra.mxu1 %v874_v47  ;;  %1546 = vmatpush3.msra.mxu0 %v1151_v61 }
 0x155   :  { %1519 = vmatprep.subr.mxu1 %v1794_v14  ;;  %1547 = vmatprep.subr.mxu0 %v1794_v14 }
 0x156   :  { %1520 = vmatpush3.msra.mxu1 %v873_v48  ;;  %1548 = vmatpush3.msra.mxu0 %v1150_v62 }
 0x157   :  { %1521 = vmatprep.subr.mxu1 %v1794_v14  ;;  %1549 = vmatprep.subr.mxu0 %v1794_v14 }
 0x158   :  { %1522 = vmatpush3.msra.mxu1 %v872_v49  ;;  %1550 = vmatpush3.msra.mxu0 %v1149_v63 }
 0x159   :  { %1523 = vmatprep.subr.mxu1 %v1794_v14  ;;  %1551 = vmatprep.subr.mxu0 %v1794_v14 }
 0x15a   :  { %1524 = vmatpush3.msra.mxu1 %v871_v50  ;;  %1552 = vmatpush3.msra.mxu0 %v1148_v0 }
 0x15b   :  { %1525 = vmatprep.subr.mxu1 %v1794_v14  ;;  %1553 = vmatprep.subr.mxu0 %v1794_v14 }
 0x15c   :  { %1526 = vmatpush3.msra.mxu1 %v870_v51  ;;  %1554 = vmatpush3.msra.mxu0 %v1147_v1 }
 0x15d   :  { %1527 = vmatprep.subr.mxu1 %v1794_v14  ;;  %1555 = vmatprep.subr.mxu0 %v1794_v14 }
 0x15e   :  { %1528 = vmatpush3.msra.mxu1 %v869_v52  ;;  %1556 = vmatpush3.msra.mxu0 %v1146_v2 }
 0x15f   :  { %1529 = vmatprep.subr.mxu1 %v1794_v14  ;;  %1557 = vmatprep.subr.mxu0 %v1794_v14 }
 0x160   :  { %1530 = vmatpush3.msra.mxu1 %v868_v54  ;;  %1558 = vmatpush3.msra.mxu0 %v1145_v3 }
 0x161   :  { %1531 = vmatprep.subr.mxu1 %v1794_v14  ;;  %1559 = vmatprep.subr.mxu0 %v1794_v14 }
 0x162   :  { %1532 = vmatpush3.msra.mxu1 %v867_v56  ;;  %1560 = vmatpush3.msra.mxu0 %v1144_v4 }
 0x163   :  { %1533 = vmatprep.subr.mxu1 %v1794_v14  ;;  %1561 = vmatprep.subr.mxu0 %v1794_v14 }
 0x164   :  { %1534 = vmatpush3.msra.mxu1 %v866_v58  ;;  %1562 = vmatpush3.msra.mxu0 %v1143_v5 }
 0x165   :  { %1578 = vmatprep.subr.mxu1 %v1794_v14  ;;  %1563 = vmatprep.subr.mxu0 %v1794_v14 }
 0x166   :  { %1564 = vmatpush3.msra.mxu0 %v1142_v6 }
 0x167   :  { %1565 = vmatprep.subr.mxu0 %v1794_v14 }
 0x203   :  { %v1464_v8 = vpop.f32.mrf.mxu1  ;;  %v1494_v9 = vpop.f32.mrf.mxu0 }
 0x204   :  { %v478_v10 = vadd.f32 %v1464_v8, %v2109_v7  ;;  %v773_v11 = vadd.f32 %v1494_v9, %v2109_v7 }
 0x205   :  { %v472_v12 = vpop.f32.mrf.mxu1  ;;  %v767_v13 = vpop.f32.mrf.mxu0 }
 0x206   :  { %v492_v15 = vmax.f32 %v478_v10, 0.0  ;;  %v787_v16 = vmax.f32 %v773_v11, 0.0  ;;  %v473_v17 = vadd.f32 %v2109_v7, %v472_v12  ;;  %v768_v18 = vadd.f32 %v2109_v7, %v767_v13 }
 0x208   :  { %v500_v19 = vcombine.high %v492_v15, %v492_v15  ;;  %v522_v20 = vsel %vm507_vm2, %v492_v15, -inf  ;;  %v795_v21 = vcombine.high %v787_v16, %v787_v16  ;;  %v816_v22 = vsel %vm507_vm2, %v787_v16, -inf  ;;  %v1467_v39 = vpop.f32.mrf.mxu1  ;;  %v1497_v46 = vpop.f32.mrf.mxu0 }
 0x209   :  { %v523_v23 = vrot.slane %v522_v20, 4  ;;  %v491_v24 = vmax.f32 %v473_v17, 0.0  ;;  %v786_v25 = vmax.f32 %v768_v18, 0.0  ;;  %v817_v27 = vrot.slane %v816_v22, 4 }
 0x20a   :  { %v529_v26 = vsel %vm507_vm2, %v500_v19, -inf  ;;  %v823_v28 = vsel %vm507_vm2, %v795_v21, -inf  ;;  %v488_v48 = vadd.f32 %v1467_v39, %v2109_v7  ;;  %v783_v54 = vadd.f32 %v1497_v46, %v2109_v7  ;;  %v482_v11 = vpop.f32.mrf.mxu1  ;;  %v777_v17 = vpop.f32.mrf.mxu0 }
 0x20b   :  { %v499_v29 = vcombine.high %v491_v24, %v491_v24  ;;  %v508_v30 = vsel %vm507_vm2, %v491_v24, -inf  ;;  %v794_v31 = vcombine.high %v786_v25, %v786_v25  ;;  %v802_v32 = vsel %vm507_vm2, %v786_v25, -inf }
 0x20c   :  { %v524_v33 = vmax.f32 %v522_v20, %v523_v23  ;;  %v530_v34 = vrot.slane %v529_v26, 4  ;;  %v509_v35 = vrot.slane %v508_v30, 4  ;;  %v803_v37 = vrot.slane %v802_v32, 4 }
 0x20d   :  { %v515_v36 = vsel %vm507_vm2, %v499_v29, -inf  ;;  %v809_v38 = vsel %vm507_vm2, %v794_v31, -inf  ;;  %v818_v40 = vmax.f32 %v816_v22, %v817_v27  ;;  %v824_v41 = vrot.slane %v823_v28, 4 }
 0x20e   :  { %v510_v42 = vmax.f32 %v508_v30, %v509_v35  ;;  %v516_v43 = vrot.slane %v515_v36, 4  ;;  %v804_v44 = vmax.f32 %v802_v32, %v803_v37  ;;  %v810_v45 = vrot.slane %v809_v38, 4 }
 0x20f   :  { %v525_v47 = vrot.slane %v524_v33, 2  ;;  %v531_v49 = vmax.f32 %v529_v26, %v530_v34  ;;  %v819_v56 = vrot.slane %v818_v40, 2  ;;  %v825_v57 = vmax.f32 %v823_v28, %v824_v41 }
 0x210   :  { %v511_v50 = vrot.slane %v510_v42, 2  ;;  %v517_v51 = vmax.f32 %v515_v36, %v516_v43  ;;  %v811_v52 = vmax.f32 %v809_v38, %v810_v45  ;;  %v805_v53 = vrot.slane %v804_v44, 2 }
 0x211   :  { %v526_v60 = vmax.f32 %v524_v33, %v525_v47  ;;  %v494_v61 = vmax.f32 %v488_v48, 0.0  ;;  %v532_v62 = vrot.slane %v531_v49, 2  ;;  %v789_v5 = vmax.f32 %v783_v54, 0.0 }
 0x212   :  { %v518_v58 = vrot.slane %v517_v51, 2  ;;  %v812_v59 = vrot.slane %v811_v52, 2  ;;  %v512_v63 = vmax.f32 %v510_v42, %v511_v50  ;;  %v806_v2 = vmax.f32 %v804_v44, %v805_v53 }
 0x213   :  { %v502_v3 = vcombine.high %v494_v61, %v494_v61  ;;  %v550_v4 = vsel %vm507_vm2, %v494_v61, -inf  ;;  %v820_v6 = vmax.f32 %v818_v40, %v819_v56  ;;  %v826_v8 = vrot.slane %v825_v57, 2 }
 0x214   :  { %v519_v0 = vmax.f32 %v517_v51, %v518_v58  ;;  %v813_v1 = vmax.f32 %v811_v52, %v812_v59  ;;  %v551_v12 = vrot.slane %v550_v4, 4  ;;  %v797_v15 = vcombine.high %v789_v5, %v789_v5 }
 0x215   :  { %v557_v13 = vsel %vm507_vm2, %v502_v3, -inf  ;;  %v844_v16 = vsel %vm507_vm2, %v789_v5, -inf  ;;  %v527_v18 = vrot.slane %v526_v60, 1  ;;  %v533_v19 = vmax.f32 %v531_v49, %v532_v62 }
 0x216   :  { %v520_v9 = vrot.slane %v519_v0, 1  ;;  %v814_v10 = vrot.slane %v813_v1, 1  ;;  %v513_v20 = vrot.slane %v512_v63, 1  ;;  %v558_v21 = vrot.slane %v557_v13, 4 }
 0x217   :  { %v807_v22 = vrot.slane %v806_v2, 1  ;;  %v845_v23 = vrot.slane %v844_v16, 4  ;;  %v851_v24 = vsel %vm507_vm2, %v797_v15, -inf  ;;  %v483_v25 = vadd.f32 %v2109_v7, %v482_v11 }
 0x218   :  { %v821_v26 = vrot.slane %v820_v6, 1  ;;  %v827_v27 = vmax.f32 %v825_v57, %v826_v8  ;;  %v852_v28 = vrot.slane %v851_v24, 4  ;;  %v778_v29 = vadd.f32 %v2109_v7, %v777_v17 }
 0x219   :  { %v521_v30 = vmax.f32 %v519_v0, %v520_v9  ;;  %v815_v31 = vmax.f32 %v813_v1, %v814_v10  ;;  %v552_v32 = vmax.f32 %v550_v4, %v551_v12  ;;  %v493_v33 = vmax.f32 %v483_v25, 0.0 }
 0x21a   :  { %v528_v34 = vmax.f32 %v526_v60, %v527_v18  ;;  %v559_v35 = vmax.f32 %v557_v13, %v558_v21  ;;  %v846_v36 = vmax.f32 %v844_v16, %v845_v23  ;;  %v788_v37 = vmax.f32 %v778_v29, 0.0 }
 0x21b   :  { %v514_v38 = vmax.f32 %v512_v63, %v513_v20  ;;  %v808_v39 = vmax.f32 %v806_v2, %v807_v22  ;;  %v853_v40 = vmax.f32 %v851_v24, %v852_v28  ;;  %v501_v41 = vcombine.high %v493_v33, %v493_v33 }
 0x21c   :  { %v534_v42 = vrot.slane %v533_v19, 1  ;;  %v822_v43 = vmax.f32 %v820_v6, %v821_v26  ;;  %v536_v44 = vsel %vm507_vm2, %v493_v33, -inf  ;;  %v796_v45 = vcombine.high %v788_v37, %v788_v37 }
 0x21d   :  { %v859_v46 = vmax.f32 %v521_v30, %v815_v31  ;;  %v553_v7 = vrot.slane %v552_v32, 2  ;;  %v537_v47 = vrot.slane %v536_v44, 4  ;;  %v543_v48 = vsel %vm507_vm2, %v501_v41, -inf }
 0x21e   :  { %v560_v49 = vrot.slane %v559_v35, 2  ;;  %v847_v50 = vrot.slane %v846_v36, 2  ;;  %v544_v51 = vrot.slane %v543_v48, 4  ;;  %v830_v52 = vsel %vm507_vm2, %v788_v37, -inf }
 0x21f   :  { %v858_v53 = vmax.f32 %v514_v38, %v808_v39  ;;  %v854_v54 = vrot.slane %v853_v40, 2  ;;  %v538_v56 = vmax.f32 %v536_v44, %v537_v47  ;;  %v831_v57 = vrot.slane %v830_v52, 4 }
 0x220   :  { %v828_v58 = vrot.slane %v827_v27, 1  ;;  %v860_v59 = vmax.f32 %v528_v34, %v822_v43  ;;  %v545_v60 = vmax.f32 %v543_v48, %v544_v51  ;;  %v837_v61 = vsel %vm507_vm2, %v796_v45, -inf  ;;  %v956_v45 = vpop.f32.mrf.mxu0  ;;  %v1140_v48 = vld [vmem:[%s2212_s13 + $0x18] sm:$0xff]  ;;  %v1138_v51 = vld [vmem:[%s2212_s13 + $0x8] sm:$0xff] }
 0x221   :  { %v969_v62 = vsel %vm968_vm5, %v859_v46, %v858_v53  ;;  %v539_v63 = vrot.slane %v538_v56, 2  ;;  %v832_v0 = vmax.f32 %v830_v52, %v831_v57  ;;  %v838_v1 = vrot.slane %v837_v61, 4  ;;  %v1137_v52 = vld [vmem:[%s2212_s13] sm:$0xff]  ;;  %v1238_v53 = vld [vmem:[%s2214_s15 + $0x38] sm:$0xff] }
 0x222   :  { %v554_v2 = vmax.f32 %v552_v32, %v553_v7  ;;  %v561_v3 = vmax.f32 %v559_v35, %v560_v49  ;;  %v848_v4 = vmax.f32 %v846_v36, %v847_v50  ;;  %v546_v5 = vrot.slane %v545_v60, 2  ;;  %v1502_v46 = vpop.f32.mrf.mxu0  ;;  %v1141_v7 = vld [vmem:[%s2212_s13 + $0x20] sm:$0xff]  ;;  %v1139_v50 = vld [vmem:[%s2212_s13 + $0x10] sm:$0xff] }
 0x223   :  { %v855_v6 = vmax.f32 %v853_v40, %v854_v54  ;;  %v540_v8 = vmax.f32 %v538_v56, %v539_v63  ;;  %v833_v9 = vrot.slane %v832_v0, 2  ;;  %v839_v10 = vmax.f32 %v837_v61, %v838_v1  ;;  %1566 = vmatpush3.msra.mxu0 %v1141_v7  ;;  %v1237_v54 = vld [vmem:[%s2214_s15 + $0x30] sm:$0xff]  ;;  %v1236_v56 = vld [vmem:[%s2214_s15 + $0x28] sm:$0xff]  ;;  %v1235_v57 = vld [vmem:[%s2214_s15 + $0x20] sm:$0xff] }
 0x224   :  { %v535_v11 = vmax.f32 %v533_v19, %v534_v42  ;;  %v829_v12 = vmax.f32 %v827_v27, %v828_v58  ;;  %v547_v13 = vmax.f32 %v545_v60, %v546_v5  ;;  %v971_v15 = vsel %vm970_vm6, %v860_v59, %v969_v62  ;;  %v1123_v47 = vpop.f32.mrf.mxu0  ;;  %1567 = vmatprep.subr.mxu0 %v1794_v14  ;;  %v1234_v58 = vld [vmem:[%s2214_s15 + $0x18] sm:$0xff]  ;;  %v1353_v61 = vld [vmem:[#allocation12] ss:$0 sm:$0xff]  ;;  %v1354_v5 = vld [vmem:[#allocation13] ss:$0 sm:$0xff] }
 0x225   :  { %v541_v16 = vrot.slane %v540_v8, 1  ;;  %v834_v17 = vmax.f32 %v832_v0, %v833_v9  ;;  %v840_v18 = vrot.slane %v839_v10, 2  ;;  %v555_v20 = vrot.slane %v554_v2, 1  ;;  %1568 = vmatpush3.msra.mxu0 %v1140_v48 }
 0x226   :  { %v562_v21 = vrot.slane %v561_v3, 1  ;;  %v849_v22 = vrot.slane %v848_v4, 1  ;;  %v548_v23 = vrot.slane %v547_v13, 1  ;;  %v856_v24 = vrot.slane %v855_v6, 1  ;;  %v1542_v49 = vpop.f32.mrf.mxu0  ;;  %1569 = vmatprep.subr.mxu0 %v1794_v14 }
 0x227   :  { %v542_v25 = vmax.f32 %v540_v8, %v541_v16  ;;  %v835_v26 = vrot.slane %v834_v17, 1  ;;  %v841_v28 = vmax.f32 %v839_v10, %v840_v18  ;;  %v861_v29 = vmax.f32 %v535_v11, %v829_v12  ;;  %1570 = vmatpush3.msra.mxu0 %v1139_v50  ;;  %v1355_v11 = vld [vmem:[%s2215_s16] ss:$0 sm:$0xff] }
 0x228   :  { %v549_v30 = vmax.f32 %v547_v13, %v548_v23  ;;  %v556_v27 = vmax.f32 %v554_v2, %v555_v20  ;;  %v850_v32 = vmax.f32 %v848_v4, %v849_v22  ;;  %v563_v34 = vmax.f32 %v561_v3, %v562_v21  ;;  %1571 = vmatprep.subr.mxu0 %v1794_v14  ;;  %v1233_v2 = vld [vmem:[%s2214_s15 + $0x10] sm:$0xff]  ;;  %v1232_v3 = vld [vmem:[%s2214_s15 + $0x8] sm:$0xff]  ;;  %v1231_v4 = vld [vmem:[%s2214_s15] sm:$0xff] }
 0x229   :  { %v836_v31 = vmax.f32 %v834_v17, %v835_v26  ;;  %v842_v19 = vrot.slane %v841_v28, 1  ;;  %v973_v33 = vsel %vm972_vm7, %v861_v29, %v971_v15  ;;  %v857_v35 = vmax.f32 %v855_v6, %v856_v24  ;;  %1572 = vmatpush3.msra.mxu0 %v1138_v51 }
 0x22a   :  { %v864_v40 = vmax.f32 %v556_v27, %v850_v32  ;;  %1573 = vmatprep.subr.mxu0 %v1794_v14 }
 0x22b   :  { %v843_v36 = vmax.f32 %v841_v28, %v842_v19  ;;  %v862_v37 = vmax.f32 %v542_v25, %v836_v31  ;;  %v865_v41 = vmax.f32 %v563_v34, %v857_v35  ;;  %1574 = vmatpush3.msra.mxu0 %v1137_v52 }
 0x22d   :  { %v863_v38 = vmax.f32 %v549_v30, %v843_v36  ;;  %v975_v39 = vsel %vm974_vm8, %v862_v37, %v973_v33 }
 0x22f   :  { %v977_v42 = vsel %vm976_vm9, %v863_v38, %v975_v39 }
 0x230   :  { %v979_v43 = vsel %vm978_vm10, %v864_v40, %v977_v42 }
 0x231   :  { %v981_v44 = vsel %vm980_vm11, %v865_v41, %v979_v43 }
 0x232   :  { %1536 = vmatmul.mubr.f32.vlgmr.msra.gmra.mxu1 %v981_v44 }
 0x233   :  { %1594 = vmatprep.mubr.msk.f32.mxu1 %vm1795_vm3, %v1794_v14  ;;  %1579 = vmatpush3.msra.mxu1 %v1238_v53 }
 0x234   :  { %1580 = vmatprep.subr.mxu1 %v1794_v14 }
 0x235   :  { %1581 = vmatpush3.msra.mxu1 %v1237_v54 }
 0x236   :  { %1582 = vmatprep.subr.mxu1 %v1794_v14 }
 0x237   :  { %1583 = vmatpush3.msra.mxu1 %v1236_v56 }
 0x238   :  { %1584 = vmatprep.subr.mxu1 %v1794_v14 }
 0x239   :  { %1585 = vmatpush3.msra.mxu1 %v1235_v57 }
 0x23a   :  { %1586 = vmatprep.subr.mxu1 %v1794_v14 }
 0x23b   :  { %1587 = vmatpush3.msra.mxu1 %v1234_v58 }
 0x23c   :  { %1588 = vmatprep.subr.mxu1 %v1794_v14 }
 0x23d   :  { %1589 = vmatpush3.msra.mxu1 %v1233_v2 }
 0x23e   :  { %1590 = vmatprep.subr.mxu1 %v1794_v14 }
 0x23f   :  { %1591 = vmatpush3.msra.mxu1 %v1232_v3 }
 0x240   :  { %1592 = vmatprep.subr.mxu1 %v1794_v14 }
 0x241   :  { %1593 = vmatpush3.msra.mxu1 %v1231_v4 }
 0x2f2   :  { %v1049_v59 = vpop.f32.mrf.mxu1 }
 0x2f3   :  { %v1050_v60 = vadd.f32 %v1049_v59, %v956_v45 }
 0x2f4   :  { %v1537_v62 = vpop.f32.mrf.mxu1 }
 0x2f5   :  { %v1127_v63 = vadd.f32 %v1123_v47, %v1050_v60 }
 0x2f7   :  { %v1135_v0 = vadd.f32 %v1353_v61, %v1127_v63 }
 0x2f9   :  { %v1136_v1 = vmax.f32 %v1135_v0, 0.0 }
 0x2fb   :  { %1576 = vmatmul.mubr.f32.vlgmr.msra.gmra.mxu0 %v1136_v1 }
 0x3bb   :  { %v1226_v6 = vpop.f32.mrf.mxu0 }
 0x3bc   :  { %v1227_v8 = vadd.f32 %v1354_v5, %v1226_v6 }
 0x3bd   :  { %v1577_v9 = vpop.f32.mrf.mxu0 }
 0x3be   :  { %v1230_v10 = vmax.f32 %v1227_v8, 0.0 }
 0x3c0   :  { %1595 = vmatmul.mubr.msk.f32.vlgmr.msra.gmra.mxu1 %vm393_vm1, %v1230_v10 }
 0x480   :  { %v1315_v12 = vpop.f32.mrf.mxu1 }
 0x481   :  { %v1316_v13 = vadd.f32 %v1355_v11, %v1315_v12 }
 0x482   :  { %v1596_v15 = vpop.f32.mrf.mxu1 }
 0x483   :  { %1611 = vtanh.f32 %v1316_v13 }
 0x490   :  { %v1612_v14 = vpop.eup %1611 }
 0x491   :  { %v1320_v16 = vmul.f32 5.0, %v1612_v14 }
 0x493   :  { %v1321_v17 = vadd.f32 %v1320_v16, %v2043_v55 }
 0x495   :  { %1322 = vst.msk [vmem:[%s2216_s17] sm:$0xff] %vm883_vm4, %v1321_v17 }
 0x496   :  { %1327 = vsyncpa [#allocation3], 1 }
 0x497   :  { %1328 = vsyncpa [#allocation5], 1 }
 0x498   :  { %1329 = vsyncpa [#allocation8], 1 }
 0x499   :  { %1330 = vsyncpa [#allocation11], 1 }
 0x49a   :  { %1331 = vsyncpa [#allocation14], 1 }

</bundles_post_ra>
